<compile_context>
chip_gen: v5e
topology: v5e:2x2
jax: 0.10.0
libtpu: 0.0.40
codegen_flags: <defaults>
</compile_context>

<pallas_src>
import jax
import jax.numpy as jnp
import numpy as np
from jax.experimental import pallas as pl
from jax.experimental.pallas import tpu as pltpu


def _leaky(x, slope=0.2):
    # LeakyReLU(0.2): max(x, 0.2*x) since slope > 0
    return jnp.maximum(x, slope * x)


# ------------------------------- the kernel --------------------------------

def bwa_kernel(v_ref, f_ref, ca_ref,
               wbw_ref, bbw_ref,
               wa1_ref, ba1_ref,
               wa2_ref, ba2_ref,
               wa3_ref, ba3_ref,
               xatn_ref, ffilt_ref):
    v = v_ref[0]                      # (C, T) f32
    f = f_ref[0]                      # (C, T) bf16 (matmul-only operand)
    ca = ca_ref[0]                    # (E, 1) f32  (precomputed channel_attn)

    C, T = v.shape
    E = bbw_ref.shape[0]
    A = ba1_ref.shape[0]

    # Boundary masks for the k=3 conv time shifts (hoisted, reused by all convs).
    col = jax.lax.broadcasted_iota(jnp.int32, (1, T), 1)
    is_first = col == 0
    is_last = col == T - 1

    def conv_k3(x_bf16, wcat_ref, b_ref, cout):
        # x_bf16: (Cin, T) bf16; wcat: (3*cout, Cin) bf16; b: (cout, 1) f32
        z = jnp.dot(wcat_ref[...], x_bf16,
                    preferred_element_type=jnp.float32)          # (3*cout, T) f32
        z0, z1, z2 = z[:cout], z[cout:2 * cout], z[2 * cout:]
        # y[:, t] = z0[:, t-1] + z1[:, t] + z2[:, t+1]   (zero padding at ends)
        prev = jnp.where(is_first, 0.0, pltpu.roll(z0, shift=1, axis=1))
        nxt = jnp.where(is_last, 0.0, pltpu.roll(z2, shift=T - 1, axis=1))
        return prev + z1 + nxt + b_ref[...]

    # bit_wise_attn: Conv1d(C->E, k=3, pad=1) + LeakyReLU
    bw = _leaky(conv_k3(f, wbw_ref, bbw_ref, E))                 # (E, T)

    # filter_feat = sigmoid(bit_wise_attn * channel_attn) * vfeat   (E == C)
    ff = jax.nn.sigmoid(bw * ca) * v                             # (C, T)
    ffilt_ref[0] = ff.astype(ffilt_ref.dtype)

    # attention head: conv(k3)+lrelu, conv(k3)+lrelu, conv(k1)->1, sigmoid
    x1 = _leaky(conv_k3(ff.astype(jnp.bfloat16), wa1_ref, ba1_ref, A))   # (A, T)
    x2 = _leaky(conv_k3(x1.astype(jnp.bfloat16), wa2_ref, ba2_ref, A))   # (A, T)
    # Final k=1, Cout=1 projection on the VPU (sublane reduce) -> lane-dense (1, T).
    x3 = jnp.sum(x2 * wa3_ref[...], axis=0, keepdims=True) + ba3_ref[...]
    xatn_ref[0] = jax.nn.sigmoid(x3).astype(xatn_ref.dtype)

    # TODO(synk): dropout layers are inference-mode identity (no in-kernel RNG).


# ------------------------------- the wrapper --------------------------------

def _vmem_limit_bytes(B, C, E, A, T):
    bf16, f32 = 2, 4
    weights = (3 * E * C + 3 * A * E + 3 * A * A) * bf16 + (E + 3 * A + 1) * f32
    io = 2 * (C * T * f32 + C * T * bf16 + E * f32) + 2 * (T * f32 + C * T * f32)
    temps = (6 * E * T + 2 * C * T + 6 * A * T + 2 * T) * f32
    est = 2 * weights + io + 2 * temps
    # floor at 32 MiB (>= default scoped limits), cap below v7x's 64 MiB physical VMEM
    return max(32 * 1024 * 1024, min(2 * est, 60 * 1024 * 1024))


def bwa_fusion_forward(vfeat, ffeat, p):
    """vfeat, ffeat: (B, C, T) float32 (PyTorch NCW). p: torch-layout parameters."""
    B, C, T = vfeat.shape
    E = p["W_bw"].shape[0]
    A = p["W_a1"].shape[0]
    assert E == C, "filter_feat broadcast requires embed_dim == n_feature"

    f32, bf16 = jnp.float32, jnp.bfloat16
    vfeat = vfeat.astype(f32)

    # channel_avg + channel_conv branch: length-1 sequence => only the center conv
    # tap sees non-padding input. Tiny (B, C) computation, done in plain JAX (f32).
    cf = jnp.mean(vfeat, axis=2)                                        # (B, C)
    ca = _leaky(cf @ p["W_ch"][:, :, 1].T.astype(f32) + p["b_ch"][None, :])
    ca = ca[:, :, None].astype(f32)                                     # (B, E, 1)

    # Pack each k=3 conv into one concatenated-tap weight (3*Cout, Cin), bf16.
    def cat_taps(W):
        return jnp.concatenate([W[:, :, 0], W[:, :, 1], W[:, :, 2]], axis=0)

    wbw = cat_taps(p["W_bw"]).astype(bf16)          # (3E, C)
    wa1 = cat_taps(p["W_a1"]).astype(bf16)          # (3A, E)
    wa2 = cat_taps(p["W_a2"]).astype(bf16)          # (3A, A)
    bbw = p["b_bw"][:, None].astype(f32)            # (E, 1)
    ba1 = p["b_a1"][:, None].astype(f32)            # (A, 1)
    ba2 = p["b_a2"][:, None].astype(f32)            # (A, 1)
    wa3 = p["W_a3"][0, :, 0][:, None].astype(f32)   # (A, 1)  (k=1 conv, Cout=1)
    ba3 = p["b_a3"].reshape(1, 1).astype(f32)       # (1, 1)

    f_bf16 = ffeat.astype(bf16)                     # matmul-only operand -> bf16 in HBM

    weight_args = [wbw, bbw, wa1, ba1, wa2, ba2, wa3, ba3]

    def full_spec(a):
        return pl.BlockSpec(a.shape, lambda b, nd=a.ndim: (0,) * nd)

    in_specs = ([pl.BlockSpec((1, C, T), lambda b: (b, 0, 0)),
                 pl.BlockSpec((1, C, T), lambda b: (b, 0, 0)),
                 pl.BlockSpec((1, E, 1), lambda b: (b, 0, 0))]
                + [full_spec(w) for w in weight_args])
    out_specs = [pl.BlockSpec((1, 1, T), lambda b: (b, 0, 0)),
                 pl.BlockSpec((1, C, T), lambda b: (b, 0, 0))]
    out_shape = [jax.ShapeDtypeStruct((B, 1, T), f32),
                 jax.ShapeDtypeStruct((B, C, T), f32)]

    x_atn, filter_feat = pl.pallas_call(
        bwa_kernel,
        grid=(B,),
        in_specs=in_specs,
        out_specs=out_specs,
        out_shape=out_shape,
        compiler_params=pltpu.CompilerParams(
            dimension_semantics=("parallel",),
            vmem_limit_bytes=_vmem_limit_bytes(B, C, E, A, T)),
    )(vfeat, f_bf16, ca, *weight_args)

    # TODO(synk): for very long T at the 1024-channel config, add a T-tile grid axis
    # with a 3-row halo (ca stays hoisted) to bound per-step VMEM on v7x.
    return x_atn, filter_feat


# ----------------------- pure-JAX reference (for check) ---------------------

def _ref_conv1d(x, W, b, pad):
    # x: (B, Cin, T); W: (Cout, Cin, K); b: (Cout,)
    B, Cin, T = x.shape
    K = W.shape[2]
    xp = jnp.pad(x, ((0, 0), (0, 0), (pad, pad)))
    Tout = T + 2 * pad - K + 1
    y = jnp.zeros((B, W.shape[0], Tout), jnp.float32)
    for k in range(K):
        y = y + jnp.einsum("bct,ec->bet", xp[:, :, k:k + Tout], W[:, :, k])
    return y + b[None, :, None]


def reference_forward(vfeat, ffeat, p):
    lrelu = lambda x: jnp.where(x > 0, x, 0.2 * x)
    cf = jnp.mean(vfeat, axis=2, keepdims=True)                       # (B,C,1)
    ca = lrelu(_ref_conv1d(cf, p["W_ch"], p["b_ch"], pad=1))          # (B,E,1)
    bw = lrelu(_ref_conv1d(ffeat, p["W_bw"], p["b_bw"], pad=1))       # (B,E,T)
    ff = jax.nn.sigmoid(bw * ca) * vfeat
    x1 = lrelu(_ref_conv1d(ff, p["W_a1"], p["b_a1"], pad=1))
    x2 = lrelu(_ref_conv1d(x1, p["W_a2"], p["b_a2"], pad=1))
    x3 = _ref_conv1d(x2, p["W_a3"], p["b_a3"], pad=0)
    return jax.nn.sigmoid(x3), ff


# ------------------------------------ main -----------------------------------

if __name__ == "__main__":
    # Small shapes consistent with the module (embed_dim must equal n_feature for
    # the filter_feat broadcast, as in the original 1024/1024 config).
    B, T = 2, 16
    C = 32          # n_feature == embed_dim (original: 1024)
    A = 16          # attention hidden dim   (original: 512)

    key = jax.random.PRNGKey(0)
    ks = jax.random.split(key, 12)

    # Torch-layout parameters: Conv1d weight (Cout, Cin, K), bias (Cout,)
    p = {
        "W_bw": jax.random.normal(ks[0], (C, C, 3), jnp.float32) * 0.1,
        "b_bw": jax.random.normal(ks[1], (C,), jnp.float32) * 0.05,
        "W_ch": jax.random.normal(ks[2], (C, C, 3), jnp.float32) * 0.1,
        "b_ch": jax.random.normal(ks[3], (C,), jnp.float32) * 0.05,
        "W_a1": jax.random.normal(ks[4], (A, C, 3), jnp.float32) * 0.1,
        "b_a1": jax.random.normal(ks[5], (A,), jnp.float32) * 0.05,
        "W_a2": jax.random.normal(ks[6], (A, A, 3), jnp.float32) * 0.1,
        "b_a2": jax.random.normal(ks[7], (A,), jnp.float32) * 0.05,
        "W_a3": jax.random.normal(ks[8], (1, A, 1), jnp.float32) * 0.1,
        "b_a3": jax.random.normal(ks[9], (1,), jnp.float32) * 0.05,
    }

    vfeat = jax.random.normal(ks[10], (B, C, T), jnp.float32)
    ffeat = jax.random.normal(ks[11], (B, C, T), jnp.float32)

    x_atn, filter_feat = bwa_fusion_forward(vfeat, ffeat, p)
    jax.block_until_ready((x_atn, filter_feat))

    x_atn_ref, filter_feat_ref = reference_forward(vfeat, ffeat, p)
    # bf16 matmul operands (f32 accumulation) -> slightly looser tolerance than f32.
    np.testing.assert_allclose(np.asarray(x_atn), np.asarray(x_atn_ref),
                               rtol=2e-2, atol=2e-2)
    np.testing.assert_allclose(np.asarray(filter_feat),
                               np.asarray(filter_feat_ref),
                               rtol=2e-2, atol=2e-2)

    assert x_atn.shape == (B, 1, T) and filter_feat.shape == (B, C, T)
    print("KERNEL_OK")
</pallas_src>

<mosaic_0001>
module attributes {stable_mosaic.version = 11 : i64} {
  func.func @bwa_kernel(%arg0: i32, %arg1: memref<1x32x16xf32, #tpu.memory_space<vmem>>, %arg2: memref<1x32x16xbf16, #tpu.memory_space<vmem>>, %arg3: memref<1x32x1xf32, #tpu.memory_space<vmem>>, %arg4: memref<96x32xbf16, #tpu.memory_space<vmem>>, %arg5: memref<32x1xf32, #tpu.memory_space<vmem>>, %arg6: memref<48x32xbf16, #tpu.memory_space<vmem>>, %arg7: memref<16x1xf32, #tpu.memory_space<vmem>>, %arg8: memref<48x16xbf16, #tpu.memory_space<vmem>>, %arg9: memref<16x1xf32, #tpu.memory_space<vmem>>, %arg10: memref<16x1xf32, #tpu.memory_space<vmem>>, %arg11: memref<1x1xf32, #tpu.memory_space<vmem>>, %arg12: memref<1x1x16xf32, #tpu.memory_space<vmem>>, %arg13: memref<1x32x16xf32, #tpu.memory_space<vmem>>) attributes {dimension_semantics = [#tpu.dimension_semantics<parallel>], iteration_bounds = array<i64: 2>, scalar_prefetch = 0 : i64, scratch_operands = 0 : i64, tpu.core_type = #tpu.core_type<tc>, window_params = [{transform_indices = @transform_0, window_bounds = array<i64: 1, 32, 16>}, {transform_indices = @transform_1, window_bounds = array<i64: 1, 32, 16>}, {transform_indices = @transform_2, window_bounds = array<i64: 1, 32, 1>}, {pipeline_mode = #tpu.pipeline_mode<synchronous>, transform_indices = @transform_3, window_bounds = array<i64: 96, 32>}, {pipeline_mode = #tpu.pipeline_mode<synchronous>, transform_indices = @transform_4, window_bounds = array<i64: 32, 1>}, {pipeline_mode = #tpu.pipeline_mode<synchronous>, transform_indices = @transform_5, window_bounds = array<i64: 48, 32>}, {pipeline_mode = #tpu.pipeline_mode<synchronous>, transform_indices = @transform_6, window_bounds = array<i64: 16, 1>}, {pipeline_mode = #tpu.pipeline_mode<synchronous>, transform_indices = @transform_7, window_bounds = array<i64: 48, 16>}, {pipeline_mode = #tpu.pipeline_mode<synchronous>, transform_indices = @transform_8, window_bounds = array<i64: 16, 1>}, {pipeline_mode = #tpu.pipeline_mode<synchronous>, transform_indices = @transform_9, window_bounds = array<i64: 16, 1>}, {pipeline_mode = #tpu.pipeline_mode<synchronous>, transform_indices = @transform_10, window_bounds = array<i64: 1, 1>}, {transform_indices = @transform_11, window_bounds = array<i64: 1, 1, 16>}, {transform_indices = @transform_12, window_bounds = array<i64: 1, 32, 16>}]} {
    %c0 = arith.constant 0 : index
    %c0_0 = arith.constant 0 : index
    %c0_1 = arith.constant 0 : index
    %0 = vector.load %arg1[%c0, %c0_0, %c0_1] : memref<1x32x16xf32, #tpu.memory_space<vmem>>, vector<1x32x16xf32>
    %1 = vector.shape_cast %0 : vector<1x32x16xf32> to vector<32x16xf32>
    %c0_2 = arith.constant 0 : index
    %c0_3 = arith.constant 0 : index
    %c0_4 = arith.constant 0 : index
    %2 = vector.load %arg2[%c0_2, %c0_3, %c0_4] : memref<1x32x16xbf16, #tpu.memory_space<vmem>>, vector<1x32x16xbf16>
    %3 = vector.shape_cast %2 : vector<1x32x16xbf16> to vector<32x16xbf16>
    %c0_5 = arith.constant 0 : index
    %c0_6 = arith.constant 0 : index
    %c0_7 = arith.constant 0 : index
    %4 = vector.load %arg3[%c0_5, %c0_6, %c0_7] : memref<1x32x1xf32, #tpu.memory_space<vmem>>, vector<1x32x1xf32>
    %5 = vector.shape_cast %4 : vector<1x32x1xf32> to vector<32x1xf32>
    %6 = tpu.iota {dimensions = array<i32: 1>} : vector<1x16xi32>
    %c0_i32 = arith.constant 0 : i32
    %7 = vector.broadcast %c0_i32 : i32 to vector<1x16xi32>
    %8 = arith.cmpi eq, %6, %7 : vector<1x16xi32>
    %c15_i32 = arith.constant 15 : i32
    %9 = vector.broadcast %c15_i32 : i32 to vector<1x16xi32>
    %10 = arith.cmpi eq, %6, %9 : vector<1x16xi32>
    %c0_8 = arith.constant 0 : index
    %c0_9 = arith.constant 0 : index
    %11 = vector.load %arg4[%c0_8, %c0_9] : memref<96x32xbf16, #tpu.memory_space<vmem>>, vector<96x32xbf16>
    %cst = arith.constant dense<0.000000e+00> : vector<96x16xf32>
    %12 = tpu.matmul %11, %3, %cst {dimension_numbers = #tpu.dot_dimension_numbers<[1], [0], [0], [1], [0, 0, 1, 1], [], []>} : vector<96x32xbf16>, vector<32x16xbf16>, vector<96x16xf32> -> vector<96x16xf32>
    %13 = vector.extract_strided_slice %12 {offsets = [0, 0], sizes = [32, 16], strides = [1, 1]} : vector<96x16xf32> to vector<32x16xf32>
    %14 = vector.extract_strided_slice %12 {offsets = [32, 0], sizes = [32, 16], strides = [1, 1]} : vector<96x16xf32> to vector<32x16xf32>
    %15 = vector.extract_strided_slice %12 {offsets = [64, 0], sizes = [32, 16], strides = [1, 1]} : vector<96x16xf32> to vector<32x16xf32>
    %c1_i32 = arith.constant 1 : i32
    %16 = tpu.dynamic_rotate %13 by %c1_i32 dim 1 : vector<32x16xf32>, i32 -> vector<32x16xf32>
    %cst_10 = arith.constant 0.000000e+00 : f32
    %17 = vector.shape_cast %8 : vector<1x16xi1> to vector<1x16xi1>
    %18 = vector.broadcast %17 : vector<1x16xi1> to vector<32x16xi1>
    %19 = vector.broadcast %cst_10 : f32 to vector<32x16xf32>
    %20 = arith.select %18, %19, %16 : vector<32x16xi1>, vector<32x16xf32>
    %c15_i32_11 = arith.constant 15 : i32
    %21 = tpu.dynamic_rotate %15 by %c15_i32_11 dim 1 : vector<32x16xf32>, i32 -> vector<32x16xf32>
    %cst_12 = arith.constant 0.000000e+00 : f32
    %22 = vector.shape_cast %10 : vector<1x16xi1> to vector<1x16xi1>
    %23 = vector.broadcast %22 : vector<1x16xi1> to vector<32x16xi1>
    %24 = vector.broadcast %cst_12 : f32 to vector<32x16xf32>
    %25 = arith.select %23, %24, %21 : vector<32x16xi1>, vector<32x16xf32>
    %26 = arith.addf %20, %14 : vector<32x16xf32>
    %27 = arith.addf %26, %25 : vector<32x16xf32>
    %c0_13 = arith.constant 0 : index
    %c0_14 = arith.constant 0 : index
    %28 = vector.load %arg5[%c0_13, %c0_14] : memref<32x1xf32, #tpu.memory_space<vmem>>, vector<32x1xf32>
    %29 = vector.broadcast %28 : vector<32x1xf32> to vector<32x16xf32>
    %30 = arith.addf %27, %29 : vector<32x16xf32>
    %cst_15 = arith.constant 2.000000e-01 : f32
    %31 = vector.broadcast %cst_15 : f32 to vector<32x16xf32>
    %32 = arith.mulf %31, %30 : vector<32x16xf32>
    %33 = arith.maximumf %30, %32 : vector<32x16xf32>
    %34 = vector.broadcast %5 : vector<32x1xf32> to vector<32x16xf32>
    %35 = arith.mulf %33, %34 : vector<32x16xf32>
    %36 = arith.negf %35 : vector<32x16xf32>
    %37 = math.exp %36 : vector<32x16xf32>
    %cst_16 = arith.constant 1.000000e+00 : f32
    %38 = vector.broadcast %cst_16 : f32 to vector<32x16xf32>
    %39 = arith.addf %38, %37 : vector<32x16xf32>
    %40 = arith.divf %38, %39 : vector<32x16xf32>
    %41 = arith.mulf %40, %1 : vector<32x16xf32>
    %c0_17 = arith.constant 0 : index
    %c0_18 = arith.constant 0 : index
    %c0_19 = arith.constant 0 : index
    %42 = vector.load %arg13[%c0_17, %c0_18, %c0_19] : memref<1x32x16xf32, #tpu.memory_space<vmem>>, vector<1x32x16xf32>
    %43 = vector.shape_cast %42 : vector<1x32x16xf32> to vector<32x16xf32>
    %44 = vector.shape_cast %41 : vector<32x16xf32> to vector<1x32x16xf32>
    tpu.vector_store %arg13[%c0_17, %c0_18, %c0_19], %44 {strides = array<i32>} : memref<1x32x16xf32, #tpu.memory_space<vmem>>, vector<1x32x16xf32>,
    %45 = arith.truncf %41 : vector<32x16xf32> to vector<32x16xbf16>
    %c0_20 = arith.constant 0 : index
    %c0_21 = arith.constant 0 : index
    %46 = vector.load %arg6[%c0_20, %c0_21] : memref<48x32xbf16, #tpu.memory_space<vmem>>, vector<48x32xbf16>
    %cst_22 = arith.constant dense<0.000000e+00> : vector<48x16xf32>
    %47 = tpu.matmul %46, %45, %cst_22 {dimension_numbers = #tpu.dot_dimension_numbers<[1], [0], [0], [1], [0, 0, 1, 1], [], []>} : vector<48x32xbf16>, vector<32x16xbf16>, vector<48x16xf32> -> vector<48x16xf32>
    %48 = vector.extract_strided_slice %47 {offsets = [0, 0], sizes = [16, 16], strides = [1, 1]} : vector<48x16xf32> to vector<16x16xf32>
    %49 = vector.extract_strided_slice %47 {offsets = [16, 0], sizes = [16, 16], strides = [1, 1]} : vector<48x16xf32> to vector<16x16xf32>
    %50 = vector.extract_strided_slice %47 {offsets = [32, 0], sizes = [16, 16], strides = [1, 1]} : vector<48x16xf32> to vector<16x16xf32>
    %c1_i32_23 = arith.constant 1 : i32
    %51 = tpu.dynamic_rotate %48 by %c1_i32_23 dim 1 : vector<16x16xf32>, i32 -> vector<16x16xf32>
    %cst_24 = arith.constant 0.000000e+00 : f32
    %52 = vector.shape_cast %8 : vector<1x16xi1> to vector<1x16xi1>
    %53 = vector.broadcast %52 : vector<1x16xi1> to vector<16x16xi1>
    %54 = vector.broadcast %cst_24 : f32 to vector<16x16xf32>
    %55 = arith.select %53, %54, %51 : vector<16x16xi1>, vector<16x16xf32>
    %c15_i32_25 = arith.constant 15 : i32
    %56 = tpu.dynamic_rotate %50 by %c15_i32_25 dim 1 : vector<16x16xf32>, i32 -> vector<16x16xf32>
    %cst_26 = arith.constant 0.000000e+00 : f32
    %57 = vector.shape_cast %10 : vector<1x16xi1> to vector<1x16xi1>
    %58 = vector.broadcast %57 : vector<1x16xi1> to vector<16x16xi1>
    %59 = vector.broadcast %cst_26 : f32 to vector<16x16xf32>
    %60 = arith.select %58, %59, %56 : vector<16x16xi1>, vector<16x16xf32>
    %61 = arith.addf %55, %49 : vector<16x16xf32>
    %62 = arith.addf %61, %60 : vector<16x16xf32>
    %c0_27 = arith.constant 0 : index
    %c0_28 = arith.constant 0 : index
    %63 = vector.load %arg7[%c0_27, %c0_28] : memref<16x1xf32, #tpu.memory_space<vmem>>, vector<16x1xf32>
    %64 = vector.broadcast %63 : vector<16x1xf32> to vector<16x16xf32>
    %65 = arith.addf %62, %64 : vector<16x16xf32>
    %cst_29 = arith.constant 2.000000e-01 : f32
    %66 = vector.broadcast %cst_29 : f32 to vector<16x16xf32>
    %67 = arith.mulf %66, %65 : vector<16x16xf32>
    %68 = arith.maximumf %65, %67 : vector<16x16xf32>
    %69 = arith.truncf %68 : vector<16x16xf32> to vector<16x16xbf16>
    %c0_30 = arith.constant 0 : index
    %c0_31 = arith.constant 0 : index
    %70 = vector.load %arg8[%c0_30, %c0_31] : memref<48x16xbf16, #tpu.memory_space<vmem>>, vector<48x16xbf16>
    %cst_32 = arith.constant dense<0.000000e+00> : vector<48x16xf32>
    %71 = tpu.matmul %70, %69, %cst_32 {dimension_numbers = #tpu.dot_dimension_numbers<[1], [0], [0], [1], [0, 0, 1, 1], [], []>} : vector<48x16xbf16>, vector<16x16xbf16>, vector<48x16xf32> -> vector<48x16xf32>
    %72 = vector.extract_strided_slice %71 {offsets = [0, 0], sizes = [16, 16], strides = [1, 1]} : vector<48x16xf32> to vector<16x16xf32>
    %73 = vector.extract_strided_slice %71 {offsets = [16, 0], sizes = [16, 16], strides = [1, 1]} : vector<48x16xf32> to vector<16x16xf32>
    %74 = vector.extract_strided_slice %71 {offsets = [32, 0], sizes = [16, 16], strides = [1, 1]} : vector<48x16xf32> to vector<16x16xf32>
    %c1_i32_33 = arith.constant 1 : i32
    %75 = tpu.dynamic_rotate %72 by %c1_i32_33 dim 1 : vector<16x16xf32>, i32 -> vector<16x16xf32>
    %cst_34 = arith.constant 0.000000e+00 : f32
    %76 = vector.shape_cast %8 : vector<1x16xi1> to vector<1x16xi1>
    %77 = vector.broadcast %76 : vector<1x16xi1> to vector<16x16xi1>
    %78 = vector.broadcast %cst_34 : f32 to vector<16x16xf32>
    %79 = arith.select %77, %78, %75 : vector<16x16xi1>, vector<16x16xf32>
    %c15_i32_35 = arith.constant 15 : i32
    %80 = tpu.dynamic_rotate %74 by %c15_i32_35 dim 1 : vector<16x16xf32>, i32 -> vector<16x16xf32>
    %cst_36 = arith.constant 0.000000e+00 : f32
    %81 = vector.shape_cast %10 : vector<1x16xi1> to vector<1x16xi1>
    %82 = vector.broadcast %81 : vector<1x16xi1> to vector<16x16xi1>
    %83 = vector.broadcast %cst_36 : f32 to vector<16x16xf32>
    %84 = arith.select %82, %83, %80 : vector<16x16xi1>, vector<16x16xf32>
    %85 = arith.addf %79, %73 : vector<16x16xf32>
    %86 = arith.addf %85, %84 : vector<16x16xf32>
    %c0_37 = arith.constant 0 : index
    %c0_38 = arith.constant 0 : index
    %87 = vector.load %arg9[%c0_37, %c0_38] : memref<16x1xf32, #tpu.memory_space<vmem>>, vector<16x1xf32>
    %88 = vector.broadcast %87 : vector<16x1xf32> to vector<16x16xf32>
    %89 = arith.addf %86, %88 : vector<16x16xf32>
    %cst_39 = arith.constant 2.000000e-01 : f32
    %90 = vector.broadcast %cst_39 : f32 to vector<16x16xf32>
    %91 = arith.mulf %90, %89 : vector<16x16xf32>
    %92 = arith.maximumf %89, %91 : vector<16x16xf32>
    %c0_40 = arith.constant 0 : index
    %c0_41 = arith.constant 0 : index
    %93 = vector.load %arg10[%c0_40, %c0_41] : memref<16x1xf32, #tpu.memory_space<vmem>>, vector<16x1xf32>
    %94 = vector.broadcast %93 : vector<16x1xf32> to vector<16x16xf32>
    %95 = arith.mulf %92, %94 : vector<16x16xf32>
    %cst_42 = arith.constant dense<0.000000e+00> : vector<16xf32>
    %96 = vector.multi_reduction <add>, %95, %cst_42 [0] : vector<16x16xf32> to vector<16xf32>
    %97 = vector.shape_cast %96 : vector<16xf32> to vector<1x16xf32>
    %c0_43 = arith.constant 0 : index
    %c0_44 = arith.constant 0 : index
    %98 = vector.load %arg11[%c0_43, %c0_44] : memref<1x1xf32, #tpu.memory_space<vmem>>, vector<1x1xf32>
    %99 = vector.broadcast %98 : vector<1x1xf32> to vector<1x16xf32>
    %100 = arith.addf %97, %99 : vector<1x16xf32>
    %101 = arith.negf %100 : vector<1x16xf32>
    %102 = math.exp %101 : vector<1x16xf32>
    %cst_45 = arith.constant 1.000000e+00 : f32
    %103 = vector.broadcast %cst_45 : f32 to vector<1x16xf32>
    %104 = arith.addf %103, %102 : vector<1x16xf32>
    %105 = arith.divf %103, %104 : vector<1x16xf32>
    %c0_46 = arith.constant 0 : index
    %c0_47 = arith.constant 0 : index
    %c0_48 = arith.constant 0 : index
    %106 = vector.load %arg12[%c0_46, %c0_47, %c0_48] : memref<1x1x16xf32, #tpu.memory_space<vmem>>, vector<1x1x16xf32>
    %107 = vector.shape_cast %106 : vector<1x1x16xf32> to vector<1x16xf32>
    %108 = vector.shape_cast %105 : vector<1x16xf32> to vector<1x1x16xf32>
    tpu.vector_store %arg12[%c0_46, %c0_47, %c0_48], %108 {strides = array<i32>} : memref<1x1x16xf32, #tpu.memory_space<vmem>>, vector<1x1x16xf32>,
    return
  }
  func.func @transform_0(%arg0: i32) -> (i32, i32, i32) {
    %c0_i32 = arith.constant 0 : i32
    %c0_i32_0 = arith.constant 0 : i32
    %c0_i32_1 = arith.constant 0 : i32
    return %arg0, %c0_i32, %c0_i32_0 : i32, i32, i32
  }
  func.func @transform_1(%arg0: i32) -> (i32, i32, i32) {
    %c0_i32 = arith.constant 0 : i32
    %c0_i32_0 = arith.constant 0 : i32
    %c0_i32_1 = arith.constant 0 : i32
    return %arg0, %c0_i32, %c0_i32_0 : i32, i32, i32
  }
  func.func @transform_2(%arg0: i32) -> (i32, i32, i32) {
    %c0_i32 = arith.constant 0 : i32
    %c0_i32_0 = arith.constant 0 : i32
    %c0_i32_1 = arith.constant 0 : i32
    return %arg0, %c0_i32, %c0_i32_0 : i32, i32, i32
  }
  func.func @transform_3(%arg0: i32) -> (i32, i32) {
    %c0_i32 = arith.constant 0 : i32
    %c0_i32_0 = arith.constant 0 : i32
    %c0_i32_1 = arith.constant 0 : i32
    return %c0_i32, %c0_i32_0 : i32, i32
  }
  func.func @transform_4(%arg0: i32) -> (i32, i32) {
    %c0_i32 = arith.constant 0 : i32
    %c0_i32_0 = arith.constant 0 : i32
    %c0_i32_1 = arith.constant 0 : i32
    return %c0_i32, %c0_i32_0 : i32, i32
  }
  func.func @transform_5(%arg0: i32) -> (i32, i32) {
    %c0_i32 = arith.constant 0 : i32
    %c0_i32_0 = arith.constant 0 : i32
    %c0_i32_1 = arith.constant 0 : i32
    return %c0_i32, %c0_i32_0 : i32, i32
  }
  func.func @transform_6(%arg0: i32) -> (i32, i32) {
    %c0_i32 = arith.constant 0 : i32
    %c0_i32_0 = arith.constant 0 : i32
    %c0_i32_1 = arith.constant 0 : i32
    return %c0_i32, %c0_i32_0 : i32, i32
  }
  func.func @transform_7(%arg0: i32) -> (i32, i32) {
    %c0_i32 = arith.constant 0 : i32
    %c0_i32_0 = arith.constant 0 : i32
    %c0_i32_1 = arith.constant 0 : i32
    return %c0_i32, %c0_i32_0 : i32, i32
  }
  func.func @transform_8(%arg0: i32) -> (i32, i32) {
    %c0_i32 = arith.constant 0 : i32
    %c0_i32_0 = arith.constant 0 : i32
    %c0_i32_1 = arith.constant 0 : i32
    return %c0_i32, %c0_i32_0 : i32, i32
  }
  func.func @transform_9(%arg0: i32) -> (i32, i32) {
    %c0_i32 = arith.constant 0 : i32
    %c0_i32_0 = arith.constant 0 : i32
    %c0_i32_1 = arith.constant 0 : i32
    return %c0_i32, %c0_i32_0 : i32, i32
  }
  func.func @transform_10(%arg0: i32) -> (i32, i32) {
    %c0_i32 = arith.constant 0 : i32
    %c0_i32_0 = arith.constant 0 : i32
    %c0_i32_1 = arith.constant 0 : i32
    return %c0_i32, %c0_i32_0 : i32, i32
  }
  func.func @transform_11(%arg0: i32) -> (i32, i32, i32) {
    %c0_i32 = arith.constant 0 : i32
    %c0_i32_0 = arith.constant 0 : i32
    %c0_i32_1 = arith.constant 0 : i32
    return %arg0, %c0_i32, %c0_i32_0 : i32, i32, i32
  }
  func.func @transform_12(%arg0: i32) -> (i32, i32, i32) {
    %c0_i32 = arith.constant 0 : i32
    %c0_i32_0 = arith.constant 0 : i32
    %c0_i32_1 = arith.constant 0 : i32
    return %arg0, %c0_i32, %c0_i32_0 : i32, i32, i32
  }
}

</mosaic_0001>

<bundles_post_ra>
// kernel: tpu_custom_call.1
= control target key start
LH: loop header
LB: loop body
LE: loop exit
PB: predicated region body
PF: predicated region fallthrough
CT: control target
= control target key end

     0   :  { %s1947_s0 = inlined_call_operand.vmem [shape: f32[2,32,16], index: 0, kind: input, shape index: {}]   ;;  %s1948_s1 = inlined_call_operand.vmem [shape: bf16[2,32,16], index: 1, kind: input, shape index: {}]   ;;  %s1949_s2 = inlined_call_operand.vmem [shape: f32[2,32,1], index: 2, kind: input, shape index: {}]   ;;  %s1950_s3 = inlined_call_operand.vmem [shape: bf16[96,32], index: 3, kind: input, shape index: {}]   ;;  %s1951_s4 = inlined_call_operand.vmem [shape: f32[32,1], index: 4, kind: input, shape index: {}]   ;;  %s1952_s5 = inlined_call_operand.vmem [shape: bf16[48,32], index: 5, kind: input, shape index: {}]   ;;  %s1953_s6 = inlined_call_operand.vmem [shape: f32[16,1], index: 6, kind: input, shape index: {}]   ;;  %s1954_s7 = inlined_call_operand.vmem [shape: bf16[48,16], index: 7, kind: input, shape index: {}]   ;;  %s1955_s8 = inlined_call_operand.vmem [shape: f32[16,1], index: 8, kind: input, shape index: {}]   ;;  %s1956_s9 = inlined_call_operand.vmem [shape: f32[16,1], index: 9, kind: input, shape index: {}]   ;;  %s1957_s10 = inlined_call_operand.<no memory space> [shape: f32[1,1], index: 10, kind: input, shape index: {}]   ;;  %s1958_s11 = inlined_call_operand.hbm [shape: f32[2,1,16], index: 11, kind: output, shape index: {0}]   ;;  %s1959_s12 = inlined_call_operand.vmem [shape: f32[2,32,16], index: 12, kind: output, shape index: {1}]  }
   0x1   :  { %1960 = sst [smem:[#allocation6_spill]] %s1947_s0  ;;  %v18_v0 = vstv %s1957_s10 }
   0x2   :  { %19 = vst [vmem:[#allocation2] sm:$0x1] %v18_v0 }
   0x3   :  { %20 = vsyncpa [#allocation4], 0 }
   0x4   :  { %22 = vsyncpa [#allocation4 + $0x1], 0  ;;  %s1570_s23 = smov 0   ;;  %s1572_s24 = smov 0  }
   0x5   :  { %s1574_s25 = smov 0   ;;  %s1576_s26 = smov 0  }
   0x6 LB: > { %s1591_s10 = sadd.s32 4294967295, %s1496_s26   ;;  %s1261_s27 = sadd.s32 4294967294, %s1496_s26   ;;  %s1496_s26 = sphi %s1576_s26, %s1971_s26   ;;  %s1492_s25 = sphi %s1574_s25, %s1970_s25   ;;  %s1488_s24 = sphi %s1572_s24, %s1969_s24   ;;  %s1484_s23 = sphi %s1570_s23, %s1968_s23  }
   0x7   : > { %s1595_s28 = sadd.s32 1, %s1496_s26   ;;  %s281_s29 = sadd.s32 1, %s1492_s25 }
   0x8   : > { %s278_s30 = ssub.s32 %s1496_s26, %s1595_s28  ;;  %p291_p0 = scmp.ne.s32.totalorder %s1492_s25, %s1488_s24 }
   0x9   : > { %p279_p1 = scmp.eq.s32.totalorder %s278_s30, 0  ;;  %p292_p2 = scmp.eq.s32.totalorder %s1591_s10, 1 }
   0xa   : > { %p297_p3 = scmp.ne.s32.totalorder %s1488_s24, %s1484_s23  ;;  %p298_p4 = scmp.eq.s32.totalorder %s1261_s27, 1 }
   0xb   : > { %s1606_s13 = scalar_select %p279_p1, %s1492_s25, %s281_s29  }
   0xc   : > { %p1608_p5 = por %p292_p2, %p291_p0  ;;  %p1612_p6 = por %p298_p4, %p297_p3 }
   0xd   : > { %p1264_p7 = scmp.ge.s32.totalorder %s1496_s26, 1  ;;  %p390_p8 = scmp.lt.s32.totalorder %s1496_s26, 3 }
   0xf   : > { %p391_p9 = pnand %p1264_p7, %p390_p8 }
  0x10   : > { %p446_p10 = scmp.lt.s32.totalorder (!%p391_p9), %s1591_s10, 1  ;;  %s1498_s22 = smov (!%p391_p9), 16  }
  0x11   : > { %394 = sbr.rel (%p391_p9) target bundleno = 1679 (0x68f), region = 64  ;;  %s1500_s27 = smov (!%p391_p9), 113  }
  0x12   : > { %s1963_s0 = sld [smem:[#allocation6_spill]] (!%p391_p9)  ;;  %s1454_s30 = scalar_lea.hbm (!%p391_p9), %s1958_s11, 2 }
  0x16   : > { %s1620_s16 = scalar_select %p446_p10, %s1591_s10, 1  ;;  %v1354_v3 = vld [vmem:[%s1950_s3] sm:$0xff]  ;;  %v1357_v4 = vld [vmem:[%s1950_s3 + $0x18] sm:$0xff]  ;;  %vm537_vm0 = vcmask 261120   ;;  %v1355_v5 = vld [vmem:[%s1950_s3 + $0x8] sm:$0xff]  ;;  %vm595_vm1 = vcmask 1047680  }
  0x17   : > { %v1358_v6 = vld [vmem:[%s1950_s3 + $0x20] sm:$0xff]  ;;  %v1359_v7 = vld [vmem:[%s1950_s3 + $0x28] sm:$0xff]  ;;  %v1356_v23 = vld [vmem:[%s1950_s3 + $0x10] sm:$0xff]  ;;  %v1499_v25 = vmov 0   ;;  %vm836_vm4 = vcmask 130048  }
  0x18   : > { %s1349_s17 = sshll.u32 %s1620_s16, 4  ;;  %1412 = vset.pattern.permute.xlu2 %v1499_v25  ;;  %1411 = vset.pattern.permute.xlu1 %v1499_v25  ;;  %v699_v36 = vld [vmem:[%s1951_s4 + $0x18] sm:$0xff]  ;;  %v698_v37 = vld [vmem:[%s1951_s4 + $0x10] sm:$0xff]  ;;  %v696_v38 = vld [vmem:[%s1951_s4] sm:$0xff]  ;;  %s1713_s29 = sshll.u32 %s1620_s16, 5 }
  0x19   : > { %s455_s20 = scalar_lea.vmem %s1948_s1, %s1349_s17  ;;  %1413 = vset.pattern.permute.xlu0 %v1499_v25  ;;  %s460_s18 = scalar_lea.vmem %s1949_s2, %s1713_s29  ;;  %v697_v57 = vld [vmem:[%s1951_s4 + $0x8] sm:$0xff] }
  0x1a   : > { %v1353_v1 = vld [vmem:[%s455_s20 + $0x8] sm:$0xff]  ;;  %v1352_v2 = vld [vmem:[%s455_s20] sm:$0xff]  ;;  %v478_v45 = vld [vmem:[%s460_s18 + $0x18] sm:$0xff]  ;;  %s1501_s16 = smov 127   ;;  %s1770_s17 = scalar_lea.vmem %s1963_s0, %s1713_s29 }
  0x1b   : > { %562 = vmatpush.bf16.msra.mxu0 %v1353_v1  ;;  %1366 = vmatpush.bf16.msra.mxu3 %v1353_v1  ;;  %v476_v47 = vld [vmem:[%s460_s18 + $0x8] sm:$0xff]  ;;  %v477_v58 = vld [vmem:[%s460_s18 + $0x10] sm:$0xff]  ;;  %v475_v59 = vld [vmem:[%s460_s18] sm:$0xff]  ;;  %s1793_s20 = scalar_lea.vmem %s1959_s12, %s1713_s29 }
  0x1f   : > { %563 = vmatpush.bf16.msra.mxu0 %v1352_v2  ;;  %1367 = vmatpush.bf16.msra.mxu3 %v1352_v2  ;;  %v479_v2 = vlaneseq }
  0x22   : > { %1305 = vmatmul.msk.bf16.vlgmr.msra.gmra.mxu0 %vm537_vm0, %v1354_v3  ;;  %1308 = vmatmul.msk.bf16.vlgmr.msra.gmra.mxu3 %vm537_vm0, %v1357_v4  ;;  %v1738_v3 = vand.u32 127, %v479_v2 }
  0x24   : > { %vm481_vm2 = vcmp.eq.s32.totalorder %v1738_v3, 0  ;;  %vm482_vm3 = vcmp.eq.s32.totalorder %v1738_v3, 15 }
  0x32   : > { %1306 = vmatmul.msk.bf16.gmra.mxu0 %vm537_vm0, %v1355_v5  ;;  %1309 = vmatmul.msk.bf16.gmra.mxu3 %vm537_vm0, %v1358_v6 }
  0x42   : > { %1310 = vmatmul.msk.bf16.gmra.mxu3 %vm537_vm0, %v1359_v7  ;;  %1307 = vmatmul.msk.bf16.gmra.mxu0 %vm537_vm0, %v1356_v23 }
  0x9f   : > { %v565_v8 = vpop.f32.mrf.mxu0 }
  0xa0   : > { %596 = vrot.lane.b32.xlu2 %v565_v8, %s1498_s22 }
  0xa5   : > { %v1647_v9 = vpop.f32.mrf.mxu3 }
  0xa7   : > { %v1649_v10 = vpop.f32.mrf.mxu0 }
  0xa8   : > { %599 = vrot.lane.b32.xlu2 %v1649_v10, %s1498_s22 }
  0xad   : > { %v1653_v11 = vpop.f32.mrf.mxu3 }
  0xaf   : > { %v570_v12 = vpop.f32.mrf.mxu0 }
  0xb0   : > { %602 = vrot.lane.b32.xlu0 %v570_v12, %s1498_s22 }
  0xb5   : > { %v1656_v13 = vpop.f32.mrf.mxu3 }
  0xb7   : > { %v572_v14 = vpop.f32.mrf.mxu0 }
  0xb8   : > { %605 = vrot.lane.b32.xlu0 %v572_v14, %s1498_s22 }
  0xbd   : > { %v1659_v15 = vpop.f32.mrf.mxu3 }
  0xbf   : > { %v575_v6 = vpop.f32.mrf.mxu0 }
  0xc0   : > { %642 = vrot.lane.b32.xlu0 %v1656_v13, %s1498_s22 }
  0xc5   : > { %v1663_v16 = vpop.f32.mrf.mxu3 }
  0xc6   : > { %648 = vrot.lane.b32.xlu1 %v1663_v16, %s1498_s22 }
  0xcd   : > { %v1667_v17 = vpop.f32.mrf.mxu3 }
  0xce   : > { %651 = vrot.lane.b32.xlu1 %v1667_v17, %s1498_s22 }
  0xd6   : > { %645 = vrot.lane.b32.xlu1 %v1659_v15, %s1498_s22 }
  0xfa   : > { %v597_v18 = vpop.permute.xlu2 %596 }
  0xfb   : > { %v598_v19 = vsel %vm595_vm1, %v597_v18, %v565_v8 }
  0xfc   : > { %608 = vrot.lane.b32.xlu0 %v598_v19, %s1498_s22 }
 0x102   : > { %v600_v28 = vpop.permute.xlu2 %599 }
 0x103   : > { %v601_v30 = vsel %vm595_vm1, %v600_v28, %v1649_v10 }
 0x122   : > { %v603_v20 = vpop.permute.xlu0 %602 }
 0x123   : > { %v604_v21 = vsel %vm595_vm1, %v603_v20, %v570_v12 }
 0x124   : > { %612 = vrot.lane.b32.xlu2 %v604_v21, %s1498_s22 }
 0x12a   : > { %v606_v22 = vpop.permute.xlu0 %605 }
 0x12b   : > { %v607_v24 = vsel %vm595_vm1, %v606_v22, %v572_v14  ;;  %v577_v22 = vpop.f32.mrf.mxu0 }
 0x12c   : > { %614 = vrot.lane.b32.xlu0 %v607_v24, %s1498_s22 }
 0x132   : > { %v643_v32 = vpop.permute.xlu0 %642 }
 0x133   : > { %v644_v35 = vsel %vm595_vm1, %v643_v32, %v1656_v13 }
 0x138   : > { %v649_v26 = vpop.permute.xlu1 %648 }
 0x139   : > { %v650_v27 = vsel %vm595_vm1, %v649_v26, %v1663_v16 }
 0x13a   : > { %658 = vrot.lane.b32.xlu1 %v650_v27, %s1498_s22 }
 0x140   : > { %v652_v29 = vpop.permute.xlu1 %651 }
 0x141   : > { %v653_v31 = vsel %vm595_vm1, %v652_v29, %v1667_v17 }
 0x142   : > { %610 = vrot.lane.b32.xlu1 %v601_v30, %s1498_s22  ;;  %660 = vrot.lane.b32.xlu2 %v653_v31, %s1498_s22 }
 0x148   : > { %v646_v33 = vpop.permute.xlu1 %645 }
 0x149   : > { %v647_v34 = vsel %vm595_vm1, %v646_v33, %v1659_v15 }
 0x14a   : > { %656 = vrot.lane.b32.xlu0 %v647_v34, %s1498_s22  ;;  %654 = vrot.lane.b32.xlu2 %v644_v35, %s1498_s22 }
 0x14b   : > { %712 = vperm.xlu1 %1411, %v698_v37  }
 0x152   : > { %717 = vperm.xlu2 %1412, %v699_v36  }
 0x15a   : > { %702 = vperm.xlu2 %1412, %v696_v38  }
 0x16e   : > { %v609_v39 = vpop.permute.xlu0 %608 }
 0x16f   : > { %v616_v40 = vsel %vm595_vm1, %v609_v39, %v565_v8 }
 0x170   : > { %626 = vrot.lane.b32.xlu2 %v616_v40, %s1500_s27 }
 0x17e   : > { %v613_v41 = vpop.permute.xlu2 %612 }
 0x17f   : > { %v618_v42 = vsel %vm595_vm1, %v613_v41, %v570_v12 }
 0x180   : > { %630 = vrot.lane.b32.xlu1 %v618_v42, %s1500_s27 }
 0x19c   : > { %v661_v48 = vpop.permute.xlu2 %660 }
 0x19d   : > { %v665_v56 = vsel %vm595_vm1, %v661_v48, %v1667_v17 }
 0x19e   : > { %v615_v43 = vpop.permute.xlu0 %614 }
 0x19f   : > { %v619_v44 = vsel %vm595_vm1, %v615_v43, %v572_v14 }
 0x1a0   : > { %632 = vrot.lane.b32.xlu2 %v619_v44, %s1500_s27 }
 0x1a4   : > { %v655_v51 = vpop.permute.xlu2 %654 }
 0x1a5   : > { %v662_v53 = vsel %vm595_vm1, %v655_v51, %v1656_v13 }
 0x1a8   : > { %749 = vperm.xlu2 %1412, %v478_v45  }
 0x1ac   : > { %v659_v46 = vpop.permute.xlu1 %658  ;;  %v718_v60 = vpop.permute.xlu2 %717 }
 0x1ad   : > { %v664_v55 = vsel %vm595_vm1, %v659_v46, %v1663_v16 }
 0x1b0   : > { %739 = vperm.xlu2 %1412, %v476_v47  }
 0x1b4   : > { %v611_v49 = vpop.permute.xlu1 %610  ;;  %v703_v62 = vpop.permute.xlu2 %702 }
 0x1b5   : > { %v617_v50 = vsel %vm595_vm1, %v611_v49, %v1649_v10 }
 0x1b6   : > { %628 = vrot.lane.b32.xlu0 %v617_v50, %s1500_s27 }
 0x1bc   : > { %v657_v52 = vpop.permute.xlu0 %656 }
 0x1bd   : > { %v663_v54 = vsel %vm595_vm1, %v657_v52, %v1659_v15  ;;  %v713_v61 = vpop.permute.xlu1 %712 }
 0x1be   : > { %672 = vrot.lane.b32.xlu0 %v662_v53, %s1501_s16  ;;  %674 = vrot.lane.b32.xlu1 %v663_v54, %s1501_s16 }
 0x1c6   : > { %676 = vrot.lane.b32.xlu0 %v664_v55, %s1501_s16  ;;  %678 = vrot.lane.b32.xlu1 %v665_v56, %s1501_s16 }
 0x1ca   : > { %v627_v1 = vpop.permute.xlu2 %626 }
 0x1cb   : > { %v638_v12 = vsel %vm481_vm2, 0.0, %v627_v1 }
 0x1cc   : > { %v688_v18 = vadd.f32 %v638_v12, %v575_v6  ;;  %v946_v12 = vld [vmem:[%s1953_s6 + $0x8] sm:$0xff] }
 0x1ce   : > { %707 = vperm.xlu0 %1413, %v697_v57   ;;  %744 = vperm.xlu1 %1411, %v477_v58  }
 0x1d6   : > { %734 = vperm.xlu1 %1411, %v475_v59  }
 0x1f2   : > { %v631_v63 = vpop.permute.xlu1 %630 }
 0x1f3   : > { %v640_v8 = vsel %vm481_vm2, 0.0, %v631_v63 }
 0x1f4   : > { %v690_v13 = vadd.f32 %v640_v8, %v1647_v9 }
 0x1fa   : > { %v633_v7 = vpop.permute.xlu2 %632 }
 0x1fb   : > { %v641_v10 = vsel %vm481_vm2, 0.0, %v633_v7 }
 0x1fc   : > { %v691_v14 = vadd.f32 %v641_v10, %v1653_v11 }
 0x202   : > { %v750_v11 = vpop.permute.xlu2 %749 }
 0x20a   : > { %v740_v45 = vpop.permute.xlu2 %739 }
 0x228   : > { %v629_v0 = vpop.permute.xlu0 %628 }
 0x229   : > { %v639_v21 = vsel %vm481_vm2, 0.0, %v629_v0 }
 0x22a   : > { %v689_v28 = vadd.f32 %v639_v21, %v577_v22 }
 0x230   : > { %v675_v4 = vpop.permute.xlu1 %674  ;;  %v673_v5 = vpop.permute.xlu0 %672 }
 0x231   : > { %v684_v15 = vsel %vm482_vm3, 0.0, %v673_v5  ;;  %v685_v25 = vsel %vm482_vm3, 0.0, %v675_v4 }
 0x232   : > { %v692_v24 = vadd.f32 %v688_v18, %v684_v15  ;;  %v693_v31 = vadd.f32 %v689_v28, %v685_v25 }
 0x234   : > { %v720_v32 = vadd.f32 %v703_v62, %v692_v24 }
 0x236   : > { %v724_v41 = vmul.f32 0.2, %v720_v32 }
 0x238   : > { %v679_v16 = vpop.permute.xlu1 %678  ;;  %v677_v17 = vpop.permute.xlu0 %676  ;;  %v728_v47 = vmax.f32 %v720_v32, %v724_v41  ;;  %v467_v41 = vld [vmem:[%s1770_s17] sm:$0xff] }
 0x239   : > { %v687_v19 = vsel %vm482_vm3, 0.0, %v679_v16  ;;  %v686_v20 = vsel %vm482_vm3, 0.0, %v677_v17 }
 0x23a   : > { %v695_v23 = vadd.f32 %v691_v14, %v687_v19  ;;  %v694_v9 = vadd.f32 %v690_v13, %v686_v20  ;;  %v470_v19 = vld [vmem:[%s1770_s17 + $0x18] sm:$0xff] }
 0x23c   : > { %v723_v26 = vadd.f32 %v718_v60, %v695_v23  ;;  %v722_v27 = vadd.f32 %v713_v61, %v694_v9  ;;  %v469_v23 = vld [vmem:[%s1770_s17 + $0x10] sm:$0xff] }
 0x23e   : > { %v727_v29 = vmul.f32 0.2, %v723_v26  ;;  %v726_v30 = vmul.f32 0.2, %v722_v27 }
 0x240   : > { %v731_v33 = vmax.f32 %v723_v26, %v727_v29  ;;  %v708_v34 = vpop.permute.xlu0 %707  ;;  %v730_v35 = vmax.f32 %v722_v27, %v726_v30  ;;  %v745_v36 = vpop.permute.xlu1 %744 }
 0x241   : > { %v721_v37 = vadd.f32 %v708_v34, %v693_v31 }
 0x242   : > { %v755_v38 = vmul.f32 %v750_v11, %v731_v33  ;;  %v754_v39 = vmul.f32 %v745_v36, %v730_v35  ;;  %v468_v36 = vld [vmem:[%s1770_s17 + $0x8] sm:$0xff]  ;;  %s1150_s17 = scalar_lea.hbm %s1958_s11, %s1591_s10 }
 0x243   : > { %v725_v40 = vmul.f32 0.2, %v721_v37  ;;  %s1154_s19 = sshll.u32 %s1150_s17, 4  ;;  %s1155_s19 = int_to_ptr.hbm [resolvable:$true] %s1154_s19 }
 0x244   : > { %v1314_v42 = vmul.f32 -1.442695, %v755_v38  ;;  %v1313_v43 = vmul.f32 -1.442695, %v754_v39 }
 0x245   : > { %v729_v44 = vmax.f32 %v721_v37, %v725_v40 }
 0x246   : > { %1414 = vpow2.f32 %v1314_v42 }
 0x247   : > { %v753_v46 = vmul.f32 %v740_v45, %v729_v44  ;;  %1416 = vpow2.f32 %v1313_v43 }
 0x248   : > { %v735_v48 = vpop.permute.xlu1 %734 }
 0x249   : > { %v1312_v49 = vmul.f32 -1.442695, %v753_v46  ;;  %v752_v50 = vmul.f32 %v735_v48, %v728_v47 }
 0x24b   : > { %1418 = vpow2.f32 %v1312_v49  ;;  %v1311_v51 = vmul.f32 -1.442695, %v752_v50  ;;  %v1360_v49 = vld [vmem:[%s1952_s5] sm:$0xff]  ;;  %v1361_v50 = vld [vmem:[%s1952_s5 + $0x8] sm:$0xff] }
 0x24c   : > { %v1415_v52 = vpop.eup %1414 }
 0x24d   : > { %v1417_v53 = vpop.eup %1416  ;;  %v771_v54 = vadd.f32 1.0, %v1415_v52  ;;  %1420 = vpow2.f32 %v1311_v51  ;;  %v1362_v51 = vld [vmem:[%s1952_s5 + $0x10] sm:$0xff] }
 0x24e   : > { %v770_v55 = vadd.f32 1.0, %v1417_v53 }
 0x24f   : > { %1422 = vrcp.f32 %v771_v54  ;;  %v826_v0 = vand.u32 2147483647, %v771_v54  ;;  %v828_v5 = vand.u32 2147483648, %v771_v54  ;;  %vm822_vm6 = vweird.f32 %v771_v54 }
 0x250   : > { %1424 = vrcp.f32 %v770_v55  ;;  %v811_v1 = vand.u32 2147483647, %v770_v55  ;;  %v813_v2 = vand.u32 2147483648, %v770_v55  ;;  %vm807_vm5 = vweird.f32 %v770_v55 }
 0x251   : > { %v1419_v56 = vpop.eup %1418  ;;  %vm1772_vm9 = vcmp.eq.f32.partialorder %v826_v0, 8.507059e+37  ;;  %v829_v18 = vor.u32 1.1754944e-38, %v828_v5  ;;  %v945_v5 = vld [vmem:[%s1953_s6] sm:$0xff] }
 0x252   : > { %v1760_v57 = vadd.f32 1.0, %v1419_v56  ;;  %vm1777_vm10 = vcmp.eq.f32.partialorder %v811_v1, 8.507059e+37  ;;  %v814_v16 = vor.u32 1.1754944e-38, %v813_v2 }
 0x253   : > { %v1421_v58 = vpop.eup %1420 }
 0x254   : > { %1426 = vrcp.f32 %v1760_v57  ;;  %v1763_v59 = vadd.f32 1.0, %v1421_v58  ;;  %vm792_vm12 = vweird.f32 %v1760_v57  ;;  %v796_v24 = vand.u32 2147483647, %v1760_v57 }
 0x255   : > { %v1423_v60 = vpop.eup %1422  ;;  %v798_v11 = vand.u32 2147483648, %v1760_v57 }
 0x256   : > { %v1425_v61 = vpop.eup %1424  ;;  %1428 = vrcp.f32 %v1763_v59  ;;  %v818_v62 = vmul.f32 %v1423_v60, %v771_v54  ;;  %vm823_vm7 = vweird.f32 %v1423_v60  ;;  %v781_v31 = vand.u32 2147483647, %v1763_v59 }
 0x257   : > { %v803_v63 = vmul.f32 %v1425_v61, %v770_v55  ;;  %vm808_vm8 = vweird.f32 %v1425_v61  ;;  %vm824_vm11 = vmor %vm822_vm6, %vm823_vm7  ;;  %v783_v32 = vand.u32 2147483648, %v1763_v59  ;;  %v799_v37 = vor.u32 1.1754944e-38, %v798_v11 }
 0x258   : > { %v819_v4 = vsub.f32 1.0, %v818_v62  ;;  %vm809_vm13 = vmor %vm807_vm5, %vm808_vm8  ;;  %vm777_vm5 = vweird.f32 %v1763_v59  ;;  %vm797_vm7 = vcmp.eq.f32.partialorder %v796_v24, 8.507059e+37 }
 0x259   : > { %v804_v6 = vsub.f32 1.0, %v803_v63  ;;  %v784_v42 = vor.u32 1.1754944e-38, %v783_v32 }
 0x25a   : > { %v1427_v7 = vpop.eup %1426  ;;  %v820_v8 = vmul.f32 %v1423_v60, %v819_v4 }
 0x25b   : > { %v805_v10 = vmul.f32 %v1425_v61, %v804_v6  ;;  %v788_v13 = vmul.f32 %v1427_v7, %v1760_v57  ;;  %vm793_vm14 = vweird.f32 %v1427_v7 }
 0x25c   : > { %v1429_v14 = vpop.eup %1428  ;;  %v821_v17 = vadd.f32 %v1423_v60, %v820_v8  ;;  %vm794_vm6 = vmor %vm792_vm12, %vm793_vm14 }
 0x25d   : > { %v806_v20 = vadd.f32 %v1425_v61, %v805_v10  ;;  %v773_v21 = vmul.f32 %v1429_v14, %v1763_v59  ;;  %v789_v22 = vsub.f32 1.0, %v788_v13  ;;  %vm778_vm15 = vweird.f32 %v1429_v14 }
 0x25e   : > { %v825_v9 = vsel %vm824_vm11, %v1423_v60, %v821_v17  ;;  %vm779_vm8 = vmor %vm777_vm5, %vm778_vm15 }
 0x25f   : > { %v810_v25 = vsel %vm809_vm13, %v1425_v61, %v806_v20  ;;  %v830_v26 = vsel %vm1772_vm9, %v829_v18, %v825_v9  ;;  %v774_v27 = vsub.f32 1.0, %v773_v21  ;;  %v790_v28 = vmul.f32 %v1427_v7, %v789_v22 }
 0x260   : > { %v815_v29 = vsel %vm1777_vm10, %v814_v16, %v810_v25  ;;  %v835_v30 = vmul.f32 %v830_v26, %v470_v19  ;;  %vm782_vm9 = vcmp.eq.f32.partialorder %v781_v31, 8.507059e+37 }
 0x261   : > { %v834_v33 = vmul.f32 %v815_v29, %v469_v23  ;;  %v775_v34 = vmul.f32 %v1429_v14, %v774_v27  ;;  %v791_v35 = vadd.f32 %v1427_v7, %v790_v28 }
 0x262   : > { %840 = vst.msk [vmem:[%s1793_s20 + $0x18] sm:$0xff] %vm836_vm4, %v835_v30 }
 0x263   : > { %839 = vst.msk [vmem:[%s1793_s20 + $0x10] sm:$0xff] %vm836_vm4, %v834_v33  ;;  %v842_v38 = vpack.c.bf16 %v835_v30, %v834_v33  ;;  %v776_v39 = vadd.f32 %v1429_v14, %v775_v34  ;;  %v795_v40 = vsel %vm794_vm6, %v1427_v7, %v791_v35  ;;  %v1363_v34 = vld [vmem:[%s1954_s7] sm:$0xff]  ;;  %v1364_v35 = vld [vmem:[%s1954_s7 + $0x8] sm:$0xff] }
 0x264   : > { %v800_v43 = vsel %vm797_vm7, %v799_v37, %v795_v40 }
 0x265   : > { %879 = vmatpush.bf16.msra.mxu1 %v842_v38  ;;  %v780_v44 = vsel %vm779_vm8, %v1429_v14, %v776_v39  ;;  %v833_v45 = vmul.f32 %v800_v43, %v468_v36  ;;  %v1365_v36 = vld [vmem:[%s1954_s7 + $0x10] sm:$0xff] }
 0x266   : > { %v785_v46 = vsel %vm782_vm9, %v784_v42, %v780_v44 }
 0x267   : > { %v832_v47 = vmul.f32 %v785_v46, %v467_v41  ;;  %838 = vst.msk [vmem:[%s1793_s20 + $0x8] sm:$0xff] %vm836_vm4, %v833_v45 }
 0x269   : > { %837 = vst.msk [vmem:[%s1793_s20] sm:$0xff] %vm836_vm4, %v832_v47  ;;  %v841_v48 = vpack.c.bf16 %v833_v45, %v832_v47  ;;  %s1448_s20 = sshra.s32 %s1155_s19, 4  ;;  %s1449_s20 = int_to_ptr.hbm [resolvable:$true] %s1448_s20 }
 0x26a   : > { %p1455_p0 = scmp.lt.s32.totalorder %s1449_s20, %s1958_s11 }
 0x26b   : > { %880 = vmatpush.bf16.msra.mxu1 %v841_v48 }
 0x26e   : > { %1327 = vmatmul.msk.bf16.vlgmr.msra.gmra.mxu1 %vm537_vm0, %v1360_v49 }
 0x27e   : > { %1328 = vmatmul.msk.bf16.gmra.mxu1 %vm537_vm0, %v1361_v50 }
 0x28e   : > { %1329 = vmatmul.msk.bf16.gmra.mxu1 %vm537_vm0, %v1362_v51 }
 0x2eb   : > { %v882_v52 = vpop.f32.mrf.mxu1 }
 0x2ec   : > { %897 = vrot.lane.b32.xlu0 %v882_v52, %s1498_s22 }
 0x2f3   : > { %v884_v53 = vpop.f32.mrf.mxu1 }
 0x2f4   : > { %900 = vrot.lane.b32.xlu1 %v884_v53, %s1498_s22 }
 0x2fb   : > { %v887_v54 = vpop.f32.mrf.mxu1 }
 0x303   : > { %v889_v55 = vpop.f32.mrf.mxu1 }
 0x30b   : > { %v892_v56 = vpop.f32.mrf.mxu1 }
 0x30c   : > { %919 = vrot.lane.b32.xlu2 %v892_v56, %s1498_s22 }
 0x313   : > { %v894_v57 = vpop.f32.mrf.mxu1 }
 0x314   : > { %922 = vrot.lane.b32.xlu0 %v894_v57, %s1498_s22 }
 0x35e   : > { %v898_v58 = vpop.permute.xlu0 %897 }
 0x35f   : > { %v899_v59 = vsel %vm595_vm1, %v898_v58, %v882_v52 }
 0x360   : > { %903 = vrot.lane.b32.xlu1 %v899_v59, %s1498_s22  ;;  %v1067_v59 = vld [vmem:[%s1955_s8 + $0x8] sm:$0xff] }
 0x366   : > { %v901_v60 = vpop.permute.xlu1 %900  ;;  %v920_v61 = vpop.permute.xlu2 %919 }
 0x367   : > { %v902_v62 = vsel %vm595_vm1, %v901_v60, %v884_v53  ;;  %v921_v63 = vsel %vm595_vm1, %v920_v61, %v892_v56  ;;  %v1085_v61 = vld [vmem:[%s1956_s9 + $0x8] sm:$0xff] }
 0x368   : > { %905 = vrot.lane.b32.xlu2 %v902_v62, %s1498_s22  ;;  %925 = vrot.lane.b32.xlu0 %v921_v63, %s1498_s22  ;;  %v1084_v62 = vld [vmem:[%s1956_s9] sm:$0xff] }
 0x369   : > { %v1107_v63 = vld [vmem:[#allocation2] sm:$0x1] }
 0x386   : > { %v923_v0 = vpop.permute.xlu0 %922 }
 0x387   : > { %v924_v1 = vsel %vm595_vm1, %v923_v0, %v894_v57 }
 0x388   : > { %927 = vrot.lane.b32.xlu1 %v924_v1, %s1498_s22 }
 0x3c2   : > { %v906_v2 = vpop.permute.xlu2 %905 }
 0x3c3   : > { %v908_v4 = vsel %vm595_vm1, %v906_v2, %v884_v53 }
 0x3c4   : > { %913 = vrot.lane.b32.xlu0 %v908_v4, %s1500_s27 }
 0x3cc   : > { %949 = vperm.xlu0 %1413, %v945_v5  }
 0x3d2   : > { %v904_v6 = vpop.permute.xlu1 %903 }
 0x3d3   : > { %v907_v7 = vsel %vm595_vm1, %v904_v6, %v882_v52 }
 0x3d4   : > { %911 = vrot.lane.b32.xlu2 %v907_v7, %s1500_s27 }
 0x3da   : > { %v926_v8 = vpop.permute.xlu0 %925 }
 0x3db   : > { %v929_v10 = vsel %vm595_vm1, %v926_v8, %v892_v56 }
 0x3dc   : > { %933 = vrot.lane.b32.xlu1 %v929_v10, %s1501_s16 }
 0x3e4   : > { %954 = vperm.xlu1 %1411, %v946_v12  }
 0x3fa   : > { %v928_v13 = vpop.permute.xlu1 %927 }
 0x3fb   : > { %v930_v14 = vsel %vm595_vm1, %v928_v13, %v894_v57  ;;  %v1066_v57 = vld [vmem:[%s1955_s8] sm:$0xff] }
 0x3fc   : > { %935 = vrot.lane.b32.xlu2 %v930_v14, %s1501_s16 }
 0x42e   : > { %v912_v15 = vpop.permute.xlu2 %911 }
 0x42f   : > { %v917_v17 = vsel %vm481_vm2, 0.0, %v912_v15 }
 0x430   : > { %v941_v20 = vadd.f32 %v917_v17, %v887_v54 }
 0x436   : > { %v914_v16 = vpop.permute.xlu0 %913 }
 0x437   : > { %v918_v22 = vsel %vm481_vm2, 0.0, %v914_v16 }
 0x438   : > { %v942_v9 = vadd.f32 %v918_v22, %v889_v55 }
 0x43e   : > { %v950_v23 = vpop.permute.xlu0 %949 }
 0x44e   : > { %v934_v18 = vpop.permute.xlu1 %933 }
 0x44f   : > { %v939_v19 = vsel %vm482_vm3, 0.0, %v934_v18 }
 0x450   : > { %v943_v21 = vadd.f32 %v941_v20, %v939_v19 }
 0x452   : > { %v957_v24 = vadd.f32 %v950_v23, %v943_v21 }
 0x454   : > { %v959_v29 = vmul.f32 0.2, %v957_v24 }
 0x456   : > { %v936_v11 = vpop.permute.xlu2 %935  ;;  %v955_v27 = vpop.permute.xlu1 %954  ;;  %v961_v31 = vmax.f32 %v957_v24, %v959_v29 }
 0x457   : > { %v940_v25 = vsel %vm482_vm3, 0.0, %v936_v11 }
 0x458   : > { %v944_v26 = vadd.f32 %v942_v9, %v940_v25 }
 0x45a   : > { %v958_v28 = vadd.f32 %v955_v27, %v944_v26 }
 0x45c   : > { %v960_v30 = vmul.f32 0.2, %v958_v28 }
 0x45e   : > { %v962_v32 = vmax.f32 %v958_v28, %v960_v30 }
 0x460   : > { %v963_v33 = vpack.c.bf16 %v962_v32, %v961_v31 }
 0x462   : > { %1001 = vmatpush.bf16.msra.mxu2 %v963_v33 }
 0x465   : > { %1342 = vmatmul.msk.bf16.vlgmr.msra.gmra.mxu2 %vm836_vm4, %v1363_v34 }
 0x475   : > { %1343 = vmatmul.msk.bf16.gmra.mxu2 %vm836_vm4, %v1364_v35 }
 0x485   : > { %1344 = vmatmul.msk.bf16.gmra.mxu2 %vm836_vm4, %v1365_v36 }
 0x4e8   : > { %v1003_v37 = vpop.f32.mrf.mxu2 }
 0x4e9   : > { %1018 = vrot.lane.b32.xlu2 %v1003_v37, %s1498_s22 }
 0x4f0   : > { %v1005_v38 = vpop.f32.mrf.mxu2 }
 0x4f1   : > { %1021 = vrot.lane.b32.xlu0 %v1005_v38, %s1498_s22 }
 0x4f8   : > { %v1008_v39 = vpop.f32.mrf.mxu2 }
 0x500   : > { %v1010_v40 = vpop.f32.mrf.mxu2 }
 0x508   : > { %v1013_v41 = vpop.f32.mrf.mxu2 }
 0x509   : > { %1040 = vrot.lane.b32.xlu1 %v1013_v41, %s1498_s22 }
 0x510   : > { %v1015_v42 = vpop.f32.mrf.mxu2 }
 0x511   : > { %1043 = vrot.lane.b32.xlu2 %v1015_v42, %s1498_s22 }
 0x543   : > { %v1019_v43 = vpop.permute.xlu2 %1018 }
 0x544   : > { %v1020_v44 = vsel %vm595_vm1, %v1019_v43, %v1003_v37 }
 0x545   : > { %1024 = vrot.lane.b32.xlu0 %v1020_v44, %s1498_s22 }
 0x563   : > { %v1022_v45 = vpop.permute.xlu0 %1021 }
 0x564   : > { %v1023_v46 = vsel %vm595_vm1, %v1022_v45, %v1005_v38 }
 0x565   : > { %1026 = vrot.lane.b32.xlu1 %v1023_v46, %s1498_s22 }
 0x56b   : > { %v1044_v47 = vpop.permute.xlu2 %1043 }
 0x56c   : > { %v1045_v48 = vsel %vm595_vm1, %v1044_v47, %v1015_v42 }
 0x56d   : > { %1048 = vrot.lane.b32.xlu0 %v1045_v48, %s1498_s22 }
 0x57b   : > { %v1041_v49 = vpop.permute.xlu1 %1040 }
 0x57c   : > { %v1042_v50 = vsel %vm595_vm1, %v1041_v49, %v1013_v41 }
 0x57d   : > { %1046 = vrot.lane.b32.xlu2 %v1042_v50, %s1498_s22 }
 0x5b7   : > { %v1025_v51 = vpop.permute.xlu0 %1024 }
 0x5b8   : > { %v1028_v52 = vsel %vm595_vm1, %v1025_v51, %v1003_v37 }
 0x5b9   : > { %1032 = vrot.lane.b32.xlu1 %v1028_v52, %s1500_s27 }
 0x5d7   : > { %v1027_v53 = vpop.permute.xlu1 %1026  ;;  %v1047_v54 = vpop.permute.xlu2 %1046 }
 0x5d8   : > { %v1029_v55 = vsel %vm595_vm1, %v1027_v53, %v1005_v38  ;;  %v1050_v56 = vsel %vm595_vm1, %v1047_v54, %v1013_v41 }
 0x5d9   : > { %1034 = vrot.lane.b32.xlu2 %v1029_v55, %s1500_s27  ;;  %1054 = vrot.lane.b32.xlu0 %v1050_v56, %s1501_s16  ;;  %s1450_s27 = scalar_lea.hbm %s1449_s20, 1 }
 0x5da   : > { %p1451_p11 = scmp.ne.s32.totalorder %s1449_s20, %s1450_s27  ;;  %p1456_p1 = scmp.lt.s32.totalorder %s1454_s30, %s1450_s27 }
 0x5dc   : > { %p1452_p12 = pnand %p1451_p11, %p1608_p5  ;;  %p1457_p2 = por %p1456_p1, %p1455_p0 }
 0x5de   : > { %p1453_p13 = pneg %p1452_p12 }
 0x5df   : > { %v1049_v58 = vpop.permute.xlu0 %1048 }
 0x5e0   : > { %v1051_v60 = vsel %vm595_vm1, %v1049_v58, %v1015_v42  ;;  %p1458_p3 = pnand %p1457_p2, %p1453_p13 }
 0x5e1   : > { %1070 = vperm.xlu2 %1412, %v1066_v57   ;;  %1056 = vrot.lane.b32.xlu1 %v1051_v60, %s1501_s16  ;;  %s437_s16 = sand.u32 1, %s1488_s24  }
 0x5e2   : > { %1075 = vperm.xlu0 %1413, %v1067_v59   ;;  %s438_s22 = scalar_lea.vmem [#allocation3], %s437_s16  ;;  %s1137_s10 = scalar_lea.sflag [#allocation4], %s437_s16 }
 0x5e3   : > { %s1152_s18 = sshll.u32 %s438_s22, 4  ;;  %s1153_s18 = int_to_ptr.vmem [resolvable:$true] %s1152_s18 }
 0x5e9   : > { %1093 = vperm.xlu2 %1412, %v1085_v61   ;;  %1088 = vperm.xlu1 %1411, %v1084_v62  }
 0x5ea   : > { %1110 = vperm.xlu0 %1413, %v1107_v63  }
 0x62b   : > { %v1033_v0 = vpop.permute.xlu1 %1032 }
 0x62c   : > { %v1038_v2 = vsel %vm481_vm2, 0.0, %v1033_v0 }
 0x62d   : > { %v1062_v5 = vadd.f32 %v1038_v2, %v1008_v39 }
 0x633   : > { %v1035_v1 = vpop.permute.xlu2 %1034 }
 0x634   : > { %v1039_v8 = vsel %vm481_vm2, 0.0, %v1035_v1 }
 0x635   : > { %v1063_v13 = vadd.f32 %v1039_v8, %v1010_v40 }
 0x63b   : > { %v1071_v10 = vpop.permute.xlu2 %1070 }
 0x643   : > { %v1094_v9 = vpop.permute.xlu2 %1093 }
 0x64b   : > { %v1055_v4 = vpop.permute.xlu0 %1054 }
 0x64c   : > { %v1060_v6 = vsel %vm482_vm3, 0.0, %v1055_v4 }
 0x64d   : > { %v1064_v7 = vadd.f32 %v1062_v5, %v1060_v6 }
 0x64f   : > { %v1078_v12 = vadd.f32 %v1071_v10, %v1064_v7 }
 0x651   : > { %v1080_v18 = vmul.f32 0.2, %v1078_v12 }
 0x653   : > { %v1057_v14 = vpop.permute.xlu1 %1056  ;;  %v1082_v21 = vmax.f32 %v1078_v12, %v1080_v18 }
 0x654   : > { %v1061_v15 = vsel %vm482_vm3, 0.0, %v1057_v14  ;;  %v1076_v17 = vpop.permute.xlu0 %1075  ;;  %vm1134_vm3 = vcmask 122880  }
 0x655   : > { %v1065_v16 = vadd.f32 %v1063_v13, %v1061_v15 }
 0x657   : > { %v1079_v19 = vadd.f32 %v1076_v17, %v1065_v16 }
 0x659   : > { %v1081_v20 = vmul.f32 0.2, %v1079_v19 }
 0x65b   : > { %v1083_v22 = vmax.f32 %v1079_v19, %v1081_v20  ;;  %v1089_v23 = vpop.permute.xlu1 %1088 }
 0x65c   : > { %v1096_v24 = vmul.f32 %v1089_v23, %v1082_v21  ;;  %v1111_v31 = vpop.permute.xlu0 %1110 }
 0x65d   : > { %v1097_v11 = vmul.f32 %v1094_v9, %v1083_v22  ;;  %v1113_v34 = vperm.slane %v1111_v31, 0 }
 0x65e   : > { %v1098_v25 = vsel %vm836_vm4, %v1096_v24, 0.0 }
 0x65f   : > { %v1099_v26 = vsel %vm836_vm4, %v1097_v11, 0.0 }
 0x660   : > { %v1100_v27 = vadd.f32 %v1099_v26, %v1098_v25 }
 0x662   : > { %v1101_v28 = vrot.slane %v1100_v27, 4 }
 0x664   : > { %v1102_v3 = vadd.f32 %v1101_v28, %v1100_v27 }
 0x666   : > { %v1103_v29 = vrot.slane %v1102_v3, 2 }
 0x668   : > { %v1104_v30 = vadd.f32 %v1103_v29, %v1102_v3 }
 0x66a   : > { %v1105_v32 = vrot.slane %v1104_v30, 1 }
 0x66c   : > { %v1106_v33 = vadd.f32 %v1105_v32, %v1104_v30 }
 0x66e   : > { %v1114_v35 = vadd.f32 %v1113_v34, %v1106_v33 }
 0x670   : > { %v1345_v36 = vmul.f32 -1.442695, %v1114_v35 }
 0x672   : > { %1430 = vpow2.f32 %v1345_v36 }
 0x678   : > { %v1431_v37 = vpop.eup %1430 }
 0x679   : > { %v1118_v38 = vadd.f32 1.0, %v1431_v37 }
 0x67b   : > { %1432 = vrcp.f32 %v1118_v38  ;;  %v1130_v42 = vand.u32 2147483648, %v1118_v38  ;;  %v1128_v44 = vand.u32 2147483647, %v1118_v38  ;;  %vm1124_vm1 = vweird.f32 %v1118_v38 }
 0x67d   : > { %v1131_v46 = vor.u32 1.1754944e-38, %v1130_v42  ;;  %vm1129_vm4 = vcmp.eq.f32.partialorder %v1128_v44, 8.507059e+37 }
 0x681   : > { %v1433_v39 = vpop.eup %1432 }
 0x682   : > { %v1120_v40 = vmul.f32 %v1433_v39, %v1118_v38  ;;  %vm1125_vm0 = vweird.f32 %v1433_v39 }
 0x683   : > { %vm1126_vm2 = vmor %vm1124_vm1, %vm1125_vm0 }
 0x684   : > { %v1121_v41 = vsub.f32 1.0, %v1120_v40 }
 0x686   : > { %v1122_v43 = vmul.f32 %v1433_v39, %v1121_v41 }
 0x688   : > { %v1123_v45 = vadd.f32 %v1433_v39, %v1122_v43 }
 0x68a   : > { %v1127_v47 = vsel %vm1126_vm2, %v1433_v39, %v1123_v45 }
 0x68b   : > { %v1132_v48 = vsel %vm1129_vm4, %v1131_v46, %v1127_v47 }
 0x68c   : > { %1135 = vst.msk [vmem:[%s438_s22] sm:$0x1] %vm1134_vm3, %v1132_v48 }
 0x68d   : > { %1461 = shalt.err (!%p1458_p3)
}
 0x68e   : > { %1368 = dma.vmem_to_hbm [thread:$0]  (%p1608_p5), %s1153_s18, 16, %s1155_s19, %s1137_s10  }
 0x68f PF: > { %p1374_p4 = scmp.ge.s32.totalorder %s1496_s26, 2  ;;  %s1169_s16 = sand.u32 1, %s1484_s23  }
 0x690   : > { %s1170_s22 = scalar_lea.sflag [#allocation4], %s1169_s16 }
 0x691   : > { %p1371_p7 = pnand %p1374_p4, %p1612_p6 }
 0x693   : > { %p1372_p8 = pneg %p1371_p7 }
 0x695   : > { %1479 = dma.done.wait (%p1372_p8), %s1170_s22, 16  }
 0x696   : > { %1481 = vsyncadd (%p1372_p8), %s1170_s22, 4294967280  ;;  %p25_p9 = scmp.ge.s32.totalorder %s1595_s28, 4   ;;  %s1968_s23 = smov %s1488_s24 }
 0x697   : > { %s1969_s24 = smov %s1492_s25  ;;  %s1970_s25 = smov %s1606_s13 }
 0x698   : > { %s1971_s26 = smov %s1595_s28  ;;  %27 = sbr.rel (!%p25_p9) target bundleno = 6 (0x6), region = 117 }
 0x69d   :  { %1183 = vsyncpa [#allocation4], 1 }
 0x69e   :  { %1185 = vsyncpa [#allocation4 + $0x1], 1 }

</bundles_post_ra>
